<compile_context>
chip_gen: v7x
topology: tpu7x:2x2x1
jax: 0.10.0
libtpu: 0.0.40
codegen_flags: <defaults>
</compile_context>

<pallas_src>
import jax
import jax.numpy as jnp
from jax import lax
from jax.experimental import pallas as pl
from jax.experimental.pallas import tpu as pltpu


def make_siglip_attention(seq_len, embed_dim, num_heads,
                          compute_dtype=jnp.bfloat16,
                          output_attentions=True,
                          heads_per_step=None):
    S, D, H = seq_len, embed_dim, num_heads
    hd = D // H
    assert hd * H == D, "embed_dim must be divisible by num_heads"
    scale = hd ** (-0.5)

    def _est_vmem_bytes(G, cdt_bytes, orig_bytes):
        Ghd = G * hd
        e = 0
        e += 2 * S * D * cdt_bytes               # x block (double-buffered)
        e += 2 * D * 3 * Ghd * cdt_bytes         # fused qkv weight block
        e += 2 * 3 * Ghd * 4                     # fused qkv bias (f32)
        e += 2 * Ghd * D * cdt_bytes             # o_proj row block
        e += 2 * D * 4                           # o_proj bias (f32)
        e += 2 * S * D * orig_bytes              # attn_output block
        if output_attentions:
            e += 2 * G * S * S * orig_bytes      # attn_weights block
        e += S * D * 4                           # f32 accumulator scratch
        e += S * 3 * Ghd * 4                     # qkv f32 temporary
        e += S * Ghd * 4                         # grouped-context temporary
        e += 6 * S * S * 4                       # softmax temporaries (one live head)
        return e

    def _pick_heads_per_step(cdt_bytes, orig_bytes):
        budget = 40 << 20                        # headroom under v7x's 64 MiB VMEM
        best = 1
        for g in range(1, H + 1):
            if H % g:
                continue
            if _est_vmem_bytes(g, cdt_bytes, orig_bytes) <= budget:
                best = g
        return best

    def forward(x, wq, bq, wk, bk, wv, bv, wo, bo):
        B = x.shape[0]
        assert x.shape == (B, S, D)
        orig_dtype = x.dtype
        cdt = compute_dtype if compute_dtype is not None else orig_dtype
        f32 = jnp.float32
        cdt_bytes = jnp.dtype(cdt).itemsize
        orig_bytes = jnp.dtype(orig_dtype).itemsize

        G = (heads_per_step if heads_per_step is not None
             else _pick_heads_per_step(cdt_bytes, orig_bytes))
        assert H % G == 0
        Hg = H // G
        Ghd = G * hd

        # fold the softmax scale into the query projection (free at runtime)
        wq_s = wq.astype(f32) * scale
        bq_s = bq.astype(f32) * scale

        # head-group packing: group hg holds heads [hg*G, (hg+1)*G); within a
        # group, all q columns first, then all k, then all v (segment
        # boundaries at Ghd -> 128-lane aligned whenever G*head_dim % 128 == 0).
        def group_cols(w):    # (D, D_out) -> (Hg, D, Ghd)
            return w.reshape(D, Hg, Ghd).transpose(1, 0, 2)

        def group_bias(b):    # (D,) -> (Hg, 1, Ghd)
            return b.reshape(Hg, 1, Ghd)

        wqkv = jnp.concatenate(
            [group_cols(wq_s), group_cols(wk.astype(f32)), group_cols(wv.astype(f32))],
            axis=-1).astype(cdt)                                          # (Hg, D, 3*Ghd)
        bqkv = jnp.concatenate(
            [group_bias(bq_s), group_bias(bk.astype(f32)), group_bias(bv.astype(f32))],
            axis=-1).astype(f32)                                           # (Hg, 1, 3*Ghd)
        wo_g = wo.astype(f32).reshape(Hg, Ghd, D).astype(cdt)              # (Hg, Ghd, D)
        bo2 = bo.astype(f32).reshape(1, D)                                 # (1, D)
        x_c = x.astype(cdt)

        def kernel(*refs):
            if output_attentions:
                (x_ref, wqkv_ref, bqkv_ref, wo_ref, bo_ref,
                 out_ref, attn_ref, acc_ref) = refs
            else:
                (x_ref, wqkv_ref, bqkv_ref, wo_ref, bo_ref,
                 out_ref, acc_ref) = refs
                attn_ref = None

            hg = pl.program_id(1)

            @pl.when(hg == 0)
            def _init():
                acc_ref[...] = jnp.zeros_like(acc_ref)

            x_t = x_ref[0]              # (S, D), compute dtype
            wqkv_t = wqkv_ref[0]        # (D, 3*Ghd)

            # fused projection for the whole head group (one MXU pass, f32 acc)
            qkv = jnp.dot(x_t, wqkv_t,
                          preferred_element_type=jnp.float32) + bqkv_ref[0]  # (S, 3*Ghd)
            q_g = qkv[:, :Ghd]
            k_g = qkv[:, Ghd:2 * Ghd]
            v_g = qkv[:, 2 * Ghd:]

            ctx_parts = []
            for g in range(G):          # static unroll over heads in the group
                lo, hi = g * hd, (g + 1) * hd
                q = q_g[:, lo:hi].astype(x_t.dtype)
                k = k_g[:, lo:hi].astype(x_t.dtype)
                v = v_g[:, lo:hi].astype(x_t.dtype)

                # scores = (scale*q) @ k^T  (scale already folded); softmax in f32
                s = lax.dot_general(q, k, (((1,), (1,)), ((), ())),
                                    preferred_element_type=jnp.float32)    # (S, S)
                m = jnp.max(s, axis=-1, keepdims=True)
                e = jnp.exp(s - m)
                denom = jnp.sum(e, axis=-1, keepdims=True)
                probs = e / denom       # exact normalization: rows sum to 1
                if attn_ref is not None:
                    attn_ref[0, g] = probs.astype(attn_ref.dtype)
                ctx_parts.append(jnp.dot(probs.astype(x_t.dtype), v,
                                         preferred_element_type=jnp.float32))

            ctx_g = (ctx_parts[0] if G == 1
                     else jnp.concatenate(ctx_parts, axis=-1)).astype(x_t.dtype)  # (S, Ghd)

            # fused output projection for the group (contraction K = G*hd)
            acc_ref[...] += jnp.dot(ctx_g, wo_ref[0],
                                    preferred_element_type=jnp.float32)    # (S, D)

            @pl.when(hg == Hg - 1)
            def _finalize():
                out_ref[0] = (acc_ref[...] + bo_ref[...]).astype(out_ref.dtype)

        in_specs = [
            pl.BlockSpec((1, S, D), lambda b, h: (b, 0, 0)),          # x (const over h)
            pl.BlockSpec((1, D, 3 * Ghd), lambda b, h: (h, 0, 0)),    # fused qkv weights
            pl.BlockSpec((1, 1, 3 * Ghd), lambda b, h: (h, 0, 0)),    # fused qkv bias
            pl.BlockSpec((1, Ghd, D), lambda b, h: (h, 0, 0)),        # o_proj rows (group)
            pl.BlockSpec((1, D), lambda b, h: (0, 0)),                # o_proj bias
        ]
        out_spec_o = pl.BlockSpec((1, S, D), lambda b, h: (b, 0, 0))  # accumulated over h
        if output_attentions:
            out_shape = (jax.ShapeDtypeStruct((B, S, D), orig_dtype),
                         jax.ShapeDtypeStruct((B, H, S, S), orig_dtype))
            out_specs = [out_spec_o,
                         pl.BlockSpec((1, G, S, S), lambda b, h: (b, h, 0, 0))]
        else:
            out_shape = jax.ShapeDtypeStruct((B, S, D), orig_dtype)
            out_specs = out_spec_o

        # always pass an explicit VMEM budget (v5e default scoped limit is only
        # 16 MiB); cap at v7x's 64 MiB physical VMEM.
        est = _est_vmem_bytes(G, cdt_bytes, orig_bytes)
        vmem_limit = int(min(max(int(est * 1.5), 32 << 20), 64 << 20))

        result = pl.pallas_call(
            kernel,
            out_shape=out_shape,
            grid_spec=pltpu.PrefetchScalarGridSpec(
                num_scalar_prefetch=0,
                grid=(B, Hg),
                in_specs=in_specs,
                out_specs=out_specs,
                scratch_shapes=[pltpu.VMEM((S, D), jnp.float32)],
            ),
            compiler_params=pltpu.CompilerParams(
                dimension_semantics=("parallel", "arbitrary"),
                vmem_limit_bytes=vmem_limit),
        )(x_c, wqkv, bqkv, wo_g, bo2)

        if output_attentions:
            out, attn_w = result
            return out, attn_w
        return result, None

    return forward


def reference(x, wq, bq, wk, bk, wv, bv, wo, bo, num_heads, scale):
    B, S, D = x.shape
    hd = D // num_heads
    q = x @ wq + bq
    k = x @ wk + bk
    v = x @ wv + bv
    q = q.reshape(B, S, num_heads, hd).transpose(0, 2, 1, 3)
    k = k.reshape(B, S, num_heads, hd).transpose(0, 2, 1, 3)
    v = v.reshape(B, S, num_heads, hd).transpose(0, 2, 1, 3)
    w = jnp.einsum('bhqd,bhkd->bhqk', q, k) * scale
    w = jax.nn.softmax(w.astype(jnp.float32), axis=-1).astype(x.dtype)
    o = jnp.einsum('bhqk,bhkd->bhqd', w, v)
    o = o.transpose(0, 2, 1, 3).reshape(B, S, D)
    o = o @ wo + bo
    return o, w


if __name__ == "__main__":
    # small shapes consistent with the module's forward
    batch, seq, hidden, heads = 2, 8, 32, 4
    head_dim = hidden // heads
    scale = head_dim ** (-0.5)

    key = jax.random.PRNGKey(0)
    ks = jax.random.split(key, 9)
    x = jax.random.normal(ks[0], (batch, seq, hidden), dtype=jnp.float32)

    # nn.Linear weights (out, in) -> pre-transposed to (in, out) for x @ W
    def lin(kw, kb):
        w = jax.random.normal(kw, (hidden, hidden), dtype=jnp.float32) * 0.05
        b = jax.random.normal(kb, (hidden,), dtype=jnp.float32) * 0.05
        return w, b

    wq, bq = lin(ks[1], ks[2])
    wk, bk = lin(ks[3], ks[4])
    wv, bv = lin(ks[5], ks[6])
    wo, bo = lin(ks[7], ks[8])

    ref_out, ref_w = reference(x, wq, bq, wk, bk, wv, bv, wo, bo, heads, scale)

    # path 1: module-equivalent (returns attention weights)
    attn_fn = make_siglip_attention(seq, hidden, heads,
                                    compute_dtype=jnp.bfloat16,
                                    output_attentions=True)
    out, attn_w = attn_fn(x, wq, bq, wk, bk, wv, bv, wo, bo)
    out = jax.block_until_ready(out)
    attn_w = jax.block_until_ready(attn_w)
    assert out.shape == (batch, seq, hidden)
    assert attn_w.shape == (batch, heads, seq, seq)
    # bf16 MXU matmuls vs an all-f32 reference -> loosened tolerance
    assert jnp.allclose(out, ref_out, atol=3e-2, rtol=3e-2)
    assert jnp.allclose(attn_w, ref_w, atol=3e-2, rtol=3e-2)

    # path 2: skip the (B,H,S,S) writeback entirely (inference fast path)
    attn_fn_fast = make_siglip_attention(seq, hidden, heads,
                                         compute_dtype=jnp.bfloat16,
                                         output_attentions=False)
    out2, none_w = attn_fn_fast(x, wq, bq, wk, bk, wv, bv, wo, bo)
    out2 = jax.block_until_ready(out2)
    assert none_w is None
    assert out2.shape == (batch, seq, hidden)
    assert jnp.allclose(out2, ref_out, atol=3e-2, rtol=3e-2)

    print("KERNEL_OK")
</pallas_src>

<mosaic_0001>
module attributes {stable_mosaic.version = 11 : i64} {
  func.func @kernel(%arg0: i32, %arg1: i32, %arg2: memref<1x8x32xbf16, #tpu.memory_space<vmem>>, %arg3: memref<1x32x96xbf16, #tpu.memory_space<vmem>>, %arg4: memref<1x1x96xf32, #tpu.memory_space<vmem>>, %arg5: memref<1x32x32xbf16, #tpu.memory_space<vmem>>, %arg6: memref<1x32xf32, #tpu.memory_space<vmem>>, %arg7: memref<1x8x32xf32, #tpu.memory_space<vmem>>, %arg8: memref<1x4x8x8xf32, #tpu.memory_space<vmem>>, %arg9: memref<8x32xf32, #tpu.memory_space<vmem>>) attributes {dimension_semantics = [#tpu.dimension_semantics<parallel>, #tpu.dimension_semantics<arbitrary>], iteration_bounds = array<i64: 2, 1>, scalar_prefetch = 0 : i64, scratch_operands = 1 : i64, tpu.core_type = #tpu.core_type<tc>, window_params = [{transform_indices = @transform_0, window_bounds = array<i64: 1, 8, 32>}, {transform_indices = @transform_1, window_bounds = array<i64: 1, 32, 96>}, {transform_indices = @transform_2, window_bounds = array<i64: 1, 1, 96>}, {transform_indices = @transform_3, window_bounds = array<i64: 1, 32, 32>}, {pipeline_mode = #tpu.pipeline_mode<synchronous>, transform_indices = @transform_4, window_bounds = array<i64: 1, 32>}, {transform_indices = @transform_5, window_bounds = array<i64: 1, 8, 32>}, {transform_indices = @transform_6, window_bounds = array<i64: 1, 4, 8, 8>}]} {
    %c0_i32 = arith.constant 0 : i32
    %0 = arith.cmpi eq, %arg1, %c0_i32 : i32
    %1 = arith.extui %0 : i1 to i32
    %c0_i32_0 = arith.constant 0 : i32
    %2 = arith.cmpi ne, %1, %c0_i32_0 : i32
    scf.if %2 {
      %cst_48 = arith.constant 0.000000e+00 : f32
      %110 = vector.broadcast %cst_48 : f32 to vector<8x32xf32>
      %c0_49 = arith.constant 0 : index
      %c0_50 = arith.constant 0 : index
      %111 = vector.load %arg9[%c0_49, %c0_50] : memref<8x32xf32, #tpu.memory_space<vmem>>, vector<8x32xf32>
      tpu.vector_store %arg9[%c0_49, %c0_50], %110 {strides = array<i32>} : memref<8x32xf32, #tpu.memory_space<vmem>>, vector<8x32xf32>,
    } else {
    }
    %c0 = arith.constant 0 : index
    %c0_1 = arith.constant 0 : index
    %c0_2 = arith.constant 0 : index
    %3 = vector.load %arg2[%c0, %c0_1, %c0_2] : memref<1x8x32xbf16, #tpu.memory_space<vmem>>, vector<1x8x32xbf16>
    %4 = vector.shape_cast %3 : vector<1x8x32xbf16> to vector<8x32xbf16>
    %c0_3 = arith.constant 0 : index
    %c0_4 = arith.constant 0 : index
    %c0_5 = arith.constant 0 : index
    %5 = vector.load %arg3[%c0_3, %c0_4, %c0_5] : memref<1x32x96xbf16, #tpu.memory_space<vmem>>, vector<1x32x96xbf16>
    %6 = vector.shape_cast %5 : vector<1x32x96xbf16> to vector<32x96xbf16>
    %cst = arith.constant dense<0.000000e+00> : vector<8x96xf32>
    %7 = tpu.matmul %4, %6, %cst {dimension_numbers = #tpu.dot_dimension_numbers<[1], [0], [0], [1], [0, 0, 1, 1], [], []>} : vector<8x32xbf16>, vector<32x96xbf16>, vector<8x96xf32> -> vector<8x96xf32>
    %c0_6 = arith.constant 0 : index
    %c0_7 = arith.constant 0 : index
    %c0_8 = arith.constant 0 : index
    %8 = vector.load %arg4[%c0_6, %c0_7, %c0_8] : memref<1x1x96xf32, #tpu.memory_space<vmem>>, vector<1x1x96xf32>
    %9 = vector.shape_cast %8 : vector<1x1x96xf32> to vector<1x96xf32>
    %10 = vector.broadcast %9 : vector<1x96xf32> to vector<8x96xf32>
    %11 = arith.addf %7, %10 : vector<8x96xf32>
    %12 = vector.extract_strided_slice %11 {offsets = [0, 0], sizes = [8, 32], strides = [1, 1]} : vector<8x96xf32> to vector<8x32xf32>
    %13 = vector.extract_strided_slice %11 {offsets = [0, 32], sizes = [8, 32], strides = [1, 1]} : vector<8x96xf32> to vector<8x32xf32>
    %14 = vector.extract_strided_slice %11 {offsets = [0, 64], sizes = [8, 32], strides = [1, 1]} : vector<8x96xf32> to vector<8x32xf32>
    %15 = vector.extract_strided_slice %12 {offsets = [0, 0], sizes = [8, 8], strides = [1, 1]} : vector<8x32xf32> to vector<8x8xf32>
    %16 = arith.truncf %15 : vector<8x8xf32> to vector<8x8xbf16>
    %17 = vector.extract_strided_slice %13 {offsets = [0, 0], sizes = [8, 8], strides = [1, 1]} : vector<8x32xf32> to vector<8x8xf32>
    %18 = arith.truncf %17 : vector<8x8xf32> to vector<8x8xbf16>
    %19 = vector.extract_strided_slice %14 {offsets = [0, 0], sizes = [8, 8], strides = [1, 1]} : vector<8x32xf32> to vector<8x8xf32>
    %20 = arith.truncf %19 : vector<8x8xf32> to vector<8x8xbf16>
    %cst_9 = arith.constant dense<0.000000e+00> : vector<8x8xf32>
    %21 = tpu.matmul %16, %18, %cst_9 {dimension_numbers = #tpu.dot_dimension_numbers<[1], [1], [0], [0], [0, 0, 1, 0], [], []>} : vector<8x8xbf16>, vector<8x8xbf16>, vector<8x8xf32> -> vector<8x8xf32>
    %cst_10 = arith.constant dense<0xFF800000> : vector<8xf32>
    %22 = vector.multi_reduction <maximumf>, %21, %cst_10 [1] : vector<8x8xf32> to vector<8xf32>
    %23 = vector.shape_cast %22 : vector<8xf32> to vector<8x1xf32>
    %24 = vector.broadcast %23 : vector<8x1xf32> to vector<8x8xf32>
    %25 = arith.subf %21, %24 : vector<8x8xf32>
    %26 = math.exp %25 : vector<8x8xf32>
    %cst_11 = arith.constant dense<0.000000e+00> : vector<8xf32>
    %27 = vector.multi_reduction <add>, %26, %cst_11 [1] : vector<8x8xf32> to vector<8xf32>
    %28 = vector.shape_cast %27 : vector<8xf32> to vector<8x1xf32>
    %29 = vector.broadcast %28 : vector<8x1xf32> to vector<8x8xf32>
    %30 = arith.divf %26, %29 : vector<8x8xf32>
    %c0_12 = arith.constant 0 : index
    %c0_13 = arith.constant 0 : index
    %c0_14 = arith.constant 0 : index
    %c0_15 = arith.constant 0 : index
    %31 = vector.load %arg8[%c0_12, %c0_13, %c0_14, %c0_15] : memref<1x4x8x8xf32, #tpu.memory_space<vmem>>, vector<1x1x8x8xf32>
    %32 = vector.shape_cast %31 : vector<1x1x8x8xf32> to vector<8x8xf32>
    %33 = vector.shape_cast %30 : vector<8x8xf32> to vector<1x1x8x8xf32>
    tpu.vector_store %arg8[%c0_12, %c0_13, %c0_14, %c0_15], %33 {strides = array<i32>} : memref<1x4x8x8xf32, #tpu.memory_space<vmem>>, vector<1x1x8x8xf32>,
    %34 = arith.truncf %30 : vector<8x8xf32> to vector<8x8xbf16>
    %cst_16 = arith.constant dense<0.000000e+00> : vector<8x8xf32>
    %35 = tpu.matmul %34, %20, %cst_16 {dimension_numbers = #tpu.dot_dimension_numbers<[1], [0], [0], [1], [0, 0, 1, 1], [], []>} : vector<8x8xbf16>, vector<8x8xbf16>, vector<8x8xf32> -> vector<8x8xf32>
    %36 = vector.extract_strided_slice %12 {offsets = [0, 8], sizes = [8, 8], strides = [1, 1]} : vector<8x32xf32> to vector<8x8xf32>
    %37 = arith.truncf %36 : vector<8x8xf32> to vector<8x8xbf16>
    %38 = vector.extract_strided_slice %13 {offsets = [0, 8], sizes = [8, 8], strides = [1, 1]} : vector<8x32xf32> to vector<8x8xf32>
    %39 = arith.truncf %38 : vector<8x8xf32> to vector<8x8xbf16>
    %40 = vector.extract_strided_slice %14 {offsets = [0, 8], sizes = [8, 8], strides = [1, 1]} : vector<8x32xf32> to vector<8x8xf32>
    %41 = arith.truncf %40 : vector<8x8xf32> to vector<8x8xbf16>
    %cst_17 = arith.constant dense<0.000000e+00> : vector<8x8xf32>
    %42 = tpu.matmul %37, %39, %cst_17 {dimension_numbers = #tpu.dot_dimension_numbers<[1], [1], [0], [0], [0, 0, 1, 0], [], []>} : vector<8x8xbf16>, vector<8x8xbf16>, vector<8x8xf32> -> vector<8x8xf32>
    %cst_18 = arith.constant dense<0xFF800000> : vector<8xf32>
    %43 = vector.multi_reduction <maximumf>, %42, %cst_18 [1] : vector<8x8xf32> to vector<8xf32>
    %44 = vector.shape_cast %43 : vector<8xf32> to vector<8x1xf32>
    %45 = vector.broadcast %44 : vector<8x1xf32> to vector<8x8xf32>
    %46 = arith.subf %42, %45 : vector<8x8xf32>
    %47 = math.exp %46 : vector<8x8xf32>
    %cst_19 = arith.constant dense<0.000000e+00> : vector<8xf32>
    %48 = vector.multi_reduction <add>, %47, %cst_19 [1] : vector<8x8xf32> to vector<8xf32>
    %49 = vector.shape_cast %48 : vector<8xf32> to vector<8x1xf32>
    %50 = vector.broadcast %49 : vector<8x1xf32> to vector<8x8xf32>
    %51 = arith.divf %47, %50 : vector<8x8xf32>
    %c0_20 = arith.constant 0 : index
    %c1 = arith.constant 1 : index
    %c0_21 = arith.constant 0 : index
    %c0_22 = arith.constant 0 : index
    %52 = vector.load %arg8[%c0_20, %c1, %c0_21, %c0_22] : memref<1x4x8x8xf32, #tpu.memory_space<vmem>>, vector<1x1x8x8xf32>
    %53 = vector.shape_cast %52 : vector<1x1x8x8xf32> to vector<8x8xf32>
    %54 = vector.shape_cast %51 : vector<8x8xf32> to vector<1x1x8x8xf32>
    tpu.vector_store %arg8[%c0_20, %c1, %c0_21, %c0_22], %54 {strides = array<i32>} : memref<1x4x8x8xf32, #tpu.memory_space<vmem>>, vector<1x1x8x8xf32>,
    %55 = arith.truncf %51 : vector<8x8xf32> to vector<8x8xbf16>
    %cst_23 = arith.constant dense<0.000000e+00> : vector<8x8xf32>
    %56 = tpu.matmul %55, %41, %cst_23 {dimension_numbers = #tpu.dot_dimension_numbers<[1], [0], [0], [1], [0, 0, 1, 1], [], []>} : vector<8x8xbf16>, vector<8x8xbf16>, vector<8x8xf32> -> vector<8x8xf32>
    %57 = vector.extract_strided_slice %12 {offsets = [0, 16], sizes = [8, 8], strides = [1, 1]} : vector<8x32xf32> to vector<8x8xf32>
    %58 = arith.truncf %57 : vector<8x8xf32> to vector<8x8xbf16>
    %59 = vector.extract_strided_slice %13 {offsets = [0, 16], sizes = [8, 8], strides = [1, 1]} : vector<8x32xf32> to vector<8x8xf32>
    %60 = arith.truncf %59 : vector<8x8xf32> to vector<8x8xbf16>
    %61 = vector.extract_strided_slice %14 {offsets = [0, 16], sizes = [8, 8], strides = [1, 1]} : vector<8x32xf32> to vector<8x8xf32>
    %62 = arith.truncf %61 : vector<8x8xf32> to vector<8x8xbf16>
    %cst_24 = arith.constant dense<0.000000e+00> : vector<8x8xf32>
    %63 = tpu.matmul %58, %60, %cst_24 {dimension_numbers = #tpu.dot_dimension_numbers<[1], [1], [0], [0], [0, 0, 1, 0], [], []>} : vector<8x8xbf16>, vector<8x8xbf16>, vector<8x8xf32> -> vector<8x8xf32>
    %cst_25 = arith.constant dense<0xFF800000> : vector<8xf32>
    %64 = vector.multi_reduction <maximumf>, %63, %cst_25 [1] : vector<8x8xf32> to vector<8xf32>
    %65 = vector.shape_cast %64 : vector<8xf32> to vector<8x1xf32>
    %66 = vector.broadcast %65 : vector<8x1xf32> to vector<8x8xf32>
    %67 = arith.subf %63, %66 : vector<8x8xf32>
    %68 = math.exp %67 : vector<8x8xf32>
    %cst_26 = arith.constant dense<0.000000e+00> : vector<8xf32>
    %69 = vector.multi_reduction <add>, %68, %cst_26 [1] : vector<8x8xf32> to vector<8xf32>
    %70 = vector.shape_cast %69 : vector<8xf32> to vector<8x1xf32>
    %71 = vector.broadcast %70 : vector<8x1xf32> to vector<8x8xf32>
    %72 = arith.divf %68, %71 : vector<8x8xf32>
    %c0_27 = arith.constant 0 : index
    %c2 = arith.constant 2 : index
    %c0_28 = arith.constant 0 : index
    %c0_29 = arith.constant 0 : index
    %73 = vector.load %arg8[%c0_27, %c2, %c0_28, %c0_29] : memref<1x4x8x8xf32, #tpu.memory_space<vmem>>, vector<1x1x8x8xf32>
    %74 = vector.shape_cast %73 : vector<1x1x8x8xf32> to vector<8x8xf32>
    %75 = vector.shape_cast %72 : vector<8x8xf32> to vector<1x1x8x8xf32>
    tpu.vector_store %arg8[%c0_27, %c2, %c0_28, %c0_29], %75 {strides = array<i32>} : memref<1x4x8x8xf32, #tpu.memory_space<vmem>>, vector<1x1x8x8xf32>,
    %76 = arith.truncf %72 : vector<8x8xf32> to vector<8x8xbf16>
    %cst_30 = arith.constant dense<0.000000e+00> : vector<8x8xf32>
    %77 = tpu.matmul %76, %62, %cst_30 {dimension_numbers = #tpu.dot_dimension_numbers<[1], [0], [0], [1], [0, 0, 1, 1], [], []>} : vector<8x8xbf16>, vector<8x8xbf16>, vector<8x8xf32> -> vector<8x8xf32>
    %78 = vector.extract_strided_slice %12 {offsets = [0, 24], sizes = [8, 8], strides = [1, 1]} : vector<8x32xf32> to vector<8x8xf32>
    %79 = arith.truncf %78 : vector<8x8xf32> to vector<8x8xbf16>
    %80 = vector.extract_strided_slice %13 {offsets = [0, 24], sizes = [8, 8], strides = [1, 1]} : vector<8x32xf32> to vector<8x8xf32>
    %81 = arith.truncf %80 : vector<8x8xf32> to vector<8x8xbf16>
    %82 = vector.extract_strided_slice %14 {offsets = [0, 24], sizes = [8, 8], strides = [1, 1]} : vector<8x32xf32> to vector<8x8xf32>
    %83 = arith.truncf %82 : vector<8x8xf32> to vector<8x8xbf16>
    %cst_31 = arith.constant dense<0.000000e+00> : vector<8x8xf32>
    %84 = tpu.matmul %79, %81, %cst_31 {dimension_numbers = #tpu.dot_dimension_numbers<[1], [1], [0], [0], [0, 0, 1, 0], [], []>} : vector<8x8xbf16>, vector<8x8xbf16>, vector<8x8xf32> -> vector<8x8xf32>
    %cst_32 = arith.constant dense<0xFF800000> : vector<8xf32>
    %85 = vector.multi_reduction <maximumf>, %84, %cst_32 [1] : vector<8x8xf32> to vector<8xf32>
    %86 = vector.shape_cast %85 : vector<8xf32> to vector<8x1xf32>
    %87 = vector.broadcast %86 : vector<8x1xf32> to vector<8x8xf32>
    %88 = arith.subf %84, %87 : vector<8x8xf32>
    %89 = math.exp %88 : vector<8x8xf32>
    %cst_33 = arith.constant dense<0.000000e+00> : vector<8xf32>
    %90 = vector.multi_reduction <add>, %89, %cst_33 [1] : vector<8x8xf32> to vector<8xf32>
    %91 = vector.shape_cast %90 : vector<8xf32> to vector<8x1xf32>
    %92 = vector.broadcast %91 : vector<8x1xf32> to vector<8x8xf32>
    %93 = arith.divf %89, %92 : vector<8x8xf32>
    %c0_34 = arith.constant 0 : index
    %c3 = arith.constant 3 : index
    %c0_35 = arith.constant 0 : index
    %c0_36 = arith.constant 0 : index
    %94 = vector.load %arg8[%c0_34, %c3, %c0_35, %c0_36] : memref<1x4x8x8xf32, #tpu.memory_space<vmem>>, vector<1x1x8x8xf32>
    %95 = vector.shape_cast %94 : vector<1x1x8x8xf32> to vector<8x8xf32>
    %96 = vector.shape_cast %93 : vector<8x8xf32> to vector<1x1x8x8xf32>
    tpu.vector_store %arg8[%c0_34, %c3, %c0_35, %c0_36], %96 {strides = array<i32>} : memref<1x4x8x8xf32, #tpu.memory_space<vmem>>, vector<1x1x8x8xf32>,
    %97 = arith.truncf %93 : vector<8x8xf32> to vector<8x8xbf16>
    %cst_37 = arith.constant dense<0.000000e+00> : vector<8x8xf32>
    %98 = tpu.matmul %97, %83, %cst_37 {dimension_numbers = #tpu.dot_dimension_numbers<[1], [0], [0], [1], [0, 0, 1, 1], [], []>} : vector<8x8xbf16>, vector<8x8xbf16>, vector<8x8xf32> -> vector<8x8xf32>
    %99 = tpu.concatenate %35, %56, %77, %98 in 1 : vector<8x8xf32>, vector<8x8xf32>, vector<8x8xf32>, vector<8x8xf32> -> vector<8x32xf32>
    %100 = arith.truncf %99 : vector<8x32xf32> to vector<8x32xbf16>
    %c0_38 = arith.constant 0 : index
    %c0_39 = arith.constant 0 : index
    %101 = vector.load %arg9[%c0_38, %c0_39] : memref<8x32xf32, #tpu.memory_space<vmem>>, vector<8x32xf32>
    %c0_40 = arith.constant 0 : index
    %c0_41 = arith.constant 0 : index
    %c0_42 = arith.constant 0 : index
    %102 = vector.load %arg5[%c0_40, %c0_41, %c0_42] : memref<1x32x32xbf16, #tpu.memory_space<vmem>>, vector<1x32x32xbf16>
    %103 = vector.shape_cast %102 : vector<1x32x32xbf16> to vector<32x32xbf16>
    %cst_43 = arith.constant dense<0.000000e+00> : vector<8x32xf32>
    %104 = tpu.matmul %100, %103, %cst_43 {dimension_numbers = #tpu.dot_dimension_numbers<[1], [0], [0], [1], [0, 0, 1, 1], [], []>} : vector<8x32xbf16>, vector<32x32xbf16>, vector<8x32xf32> -> vector<8x32xf32>
    %105 = arith.addf %101, %104 : vector<8x32xf32>
    %c0_44 = arith.constant 0 : index
    %c0_45 = arith.constant 0 : index
    %106 = vector.load %arg9[%c0_44, %c0_45] : memref<8x32xf32, #tpu.memory_space<vmem>>, vector<8x32xf32>
    tpu.vector_store %arg9[%c0_44, %c0_45], %105 {strides = array<i32>} : memref<8x32xf32, #tpu.memory_space<vmem>>, vector<8x32xf32>,
    %c0_i32_46 = arith.constant 0 : i32
    %107 = arith.cmpi eq, %arg1, %c0_i32_46 : i32
    %108 = arith.extui %107 : i1 to i32
    %c0_i32_47 = arith.constant 0 : i32
    %109 = arith.cmpi ne, %108, %c0_i32_47 : i32
    scf.if %109 {
      %c0_48 = arith.constant 0 : index
      %c0_49 = arith.constant 0 : index
      %110 = vector.load %arg9[%c0_48, %c0_49] : memref<8x32xf32, #tpu.memory_space<vmem>>, vector<8x32xf32>
      %c0_50 = arith.constant 0 : index
      %c0_51 = arith.constant 0 : index
      %111 = vector.load %arg6[%c0_50, %c0_51] : memref<1x32xf32, #tpu.memory_space<vmem>>, vector<1x32xf32>
      %112 = vector.broadcast %111 : vector<1x32xf32> to vector<8x32xf32>
      %113 = arith.addf %110, %112 : vector<8x32xf32>
      %c0_52 = arith.constant 0 : index
      %c0_53 = arith.constant 0 : index
      %c0_54 = arith.constant 0 : index
      %114 = vector.load %arg7[%c0_52, %c0_53, %c0_54] : memref<1x8x32xf32, #tpu.memory_space<vmem>>, vector<1x8x32xf32>
      %115 = vector.shape_cast %114 : vector<1x8x32xf32> to vector<8x32xf32>
      %116 = vector.shape_cast %113 : vector<8x32xf32> to vector<1x8x32xf32>
      tpu.vector_store %arg7[%c0_52, %c0_53, %c0_54], %116 {strides = array<i32>} : memref<1x8x32xf32, #tpu.memory_space<vmem>>, vector<1x8x32xf32>,
    } else {
    }
    return
  }
  func.func @transform_0(%arg0: i32, %arg1: i32) -> (i32, i32, i32) {
    %c0_i32 = arith.constant 0 : i32
    %c0_i32_0 = arith.constant 0 : i32
    %c0_i32_1 = arith.constant 0 : i32
    return %arg0, %c0_i32, %c0_i32_0 : i32, i32, i32
  }
  func.func @transform_1(%arg0: i32, %arg1: i32) -> (i32, i32, i32) {
    %c0_i32 = arith.constant 0 : i32
    %c0_i32_0 = arith.constant 0 : i32
    %c0_i32_1 = arith.constant 0 : i32
    return %arg1, %c0_i32, %c0_i32_0 : i32, i32, i32
  }
  func.func @transform_2(%arg0: i32, %arg1: i32) -> (i32, i32, i32) {
    %c0_i32 = arith.constant 0 : i32
    %c0_i32_0 = arith.constant 0 : i32
    %c0_i32_1 = arith.constant 0 : i32
    return %arg1, %c0_i32, %c0_i32_0 : i32, i32, i32
  }
  func.func @transform_3(%arg0: i32, %arg1: i32) -> (i32, i32, i32) {
    %c0_i32 = arith.constant 0 : i32
    %c0_i32_0 = arith.constant 0 : i32
    %c0_i32_1 = arith.constant 0 : i32
    return %arg1, %c0_i32, %c0_i32_0 : i32, i32, i32
  }
  func.func @transform_4(%arg0: i32, %arg1: i32) -> (i32, i32) {
    %c0_i32 = arith.constant 0 : i32
    %c0_i32_0 = arith.constant 0 : i32
    %c0_i32_1 = arith.constant 0 : i32
    return %c0_i32, %c0_i32_0 : i32, i32
  }
  func.func @transform_5(%arg0: i32, %arg1: i32) -> (i32, i32, i32) {
    %c0_i32 = arith.constant 0 : i32
    %c0_i32_0 = arith.constant 0 : i32
    %c0_i32_1 = arith.constant 0 : i32
    return %arg0, %c0_i32, %c0_i32_0 : i32, i32, i32
  }
  func.func @transform_6(%arg0: i32, %arg1: i32) -> (i32, i32, i32, i32) {
    %c0_i32 = arith.constant 0 : i32
    %c0_i32_0 = arith.constant 0 : i32
    %c0_i32_1 = arith.constant 0 : i32
    return %arg0, %arg1, %c0_i32, %c0_i32_0 : i32, i32, i32, i32
  }
}

</mosaic_0001>

<bundles_post_ra>
// kernel: tpu_custom_call.1
= control target key start
LH: loop header
LB: loop body
LE: loop exit
PB: predicated region body
PF: predicated region fallthrough
CT: control target
= control target key end

     0   :  { %12 = vsyncpa [#allocation4], 0  ;;  %s2054_s0 = inlined_call_operand.hbm [shape: bf16[2,8,32], index: 0, kind: input, shape index: {}]   ;;  %s2055_s1 = inlined_call_operand.hbm [shape: bf16[1,32,96], index: 1, kind: input, shape index: {}]   ;;  %s2056_s2 = inlined_call_operand.vmem [shape: f32[1,1,96], index: 2, kind: input, shape index: {}]   ;;  %s2057_s3 = inlined_call_operand.hbm [shape: bf16[1,32,32], index: 3, kind: input, shape index: {}]   ;;  %s2058_s4 = inlined_call_operand.vmem [shape: f32[1,32], index: 4, kind: input, shape index: {}]   ;;  %s2059_s5 = inlined_call_operand.hbm [shape: f32[2,8,32], index: 5, kind: output, shape index: {0}]   ;;  %s2060_s6 = inlined_call_operand.hbm [shape: f32[2,4,8,8], index: 6, kind: output, shape index: {1}]  }
   0x1   :  { %14 = vsyncpa [#allocation4 + $0x1], 0 }
   0x2   :  { %15 = vsyncpa [#allocation7], 0 }
   0x3   :  { %16 = vsyncpa [#allocation5], 0 }
   0x4   :  { %18 = vsyncpa [#allocation5 + $0x1], 0 }
   0x5   :  { %19 = vsyncpa [#allocation11], 0 }
   0x6   :  { %21 = vsyncpa [#allocation11 + $0x1], 0  ;;  %s1674_s21 = smov 0   ;;  %s1676_s22 = smov 0  }
   0x7   :  { %s1678_s23 = smov 0   ;;  %s1680_s24 = smov 0  }
   0x8   :  { %s1682_s25 = smov 0   ;;  %s1684_s26 = smov 0  }
   0x9 LB: > { %s1154_s27 = sadd.s32 4294967295, %s1613_s26   ;;  %s1155_s28 = sadd.s32 4294967294, %s1613_s26   ;;  %s1613_s26 = sphi %s1684_s26, %s27_s26   ;;  %s1609_s25 = sphi %s1682_s25, %s2085_s25   ;;  %s1605_s24 = sphi %s1680_s24, %s2084_s24   ;;  %s1601_s23 = sphi %s1678_s23, %s2083_s23   ;;  %s1597_s22 = sphi %s1676_s22, %s2082_s22   ;;  %s1593_s21 = sphi %s1674_s21, %s2081_s21  }
   0xa   : > { %p59_p0 = scmp.ne.s32.totalorder %s1597_s22, %s1593_s21  ;;  %p1708_p1 = scmp.eq.s32.totalorder %s1154_s27, 0 }
   0xb   : > { %p1712_p2 = scmp.eq.s32.totalorder %s1154_s27, 1  ;;  %p188_p3 = scmp.eq.s32.totalorder %s1155_s28, 1 }
   0xc   : > { %s2066_s29 = scalar_select %p1708_p1, 1, 0 }
   0xd   : > { %p1718_p4 = por %p1708_p1, %p59_p0  ;;  %p1156_p5 = scmp.ge.s32.totalorder %s1613_s26, 1 }
   0xe   : > { %p1723_p6 = por %p188_p3, %p59_p0  ;;  %p223_p7 = scmp.lt.s32.totalorder %s1613_s26, 3 }
   0xf   : > { %s2068_s7 = scalar_select %p1718_p4, 1, 0 }
  0x10   : > { %s2069_s8 = scalar_select %p1723_p6, 1, 0 }
  0x11   : > { %p1728_p8 = pnand %p1156_p5, %p223_p7  ;;  %s1615_s10 = smov [#allocation6]  }
  0x12   : > { %2070 = sst [smem:[#allocation16_spill]] %s2069_s8  ;;  %s238_s11 = sshll.u32 %s1615_s10, 4  ;;  %s1732_s11 = int_to_ptr.vmem [resolvable:$true] %s238_s11 }
  0x13   : > { %p1296_p9 = pneg %p1728_p8  ;;  %s1616_s13 = smov [#allocation8]  }
  0x14   : > { %s260_s14 = sshll.u32 %s1616_s13, 4  ;;  %s1409_s17 = scalar_lea.hbm %s2055_s1, 256  ;;  %s1743_s14 = int_to_ptr.vmem [resolvable:$true] %s260_s14 }
  0x15   : > { %p1739_p11 = pnand %p1296_p9, %p1708_p1  ;;  %p1410_p12 = scmp.ne.s32.totalorder %s2055_s1, %s1409_s17 }
  0x16   : > { %p1416_p5 = scmp.lt.u32.totalorder %s1409_s17, %s2055_s1 }
  0x17   : > { %p1411_p13 = pneg %p1739_p11 }
  0x19   : > { %p1412_p0 = pnand %p1411_p13, %p1410_p12 }
  0x1b   : > { %p1413_p3 = pneg %p1412_p0 }
  0x1d   : > { %p1418_p7 = pnand %p1416_p5, %p1413_p3 }
  0x1f   : > { %1421 = shalt.err (!%p1418_p7)
}
  0x20   : > { %s1422_s28 = scalar_lea.vmem %s1732_s11, 256  ;;  %p1430_p1 = scmp.lt.s32.totalorder %s1732_s11, %s1732_s11 }
  0x21   : > { %p1423_p9 = scmp.ne.s32.totalorder %s1732_s11, %s1422_s28  ;;  %p1431_p12 = scmp.lt.s32.totalorder %s1422_s28, %s1422_s28 }
  0x23   : > { %p1425_p10 = pnand %p1423_p9, %p1411_p13  ;;  %p1432_p0 = por %p1431_p12, %p1430_p1 }
  0x25   : > { %p1426_p6 = pneg %p1425_p10 }
  0x27   : > { %p1433_p4 = pnand %p1432_p0, %p1426_p6 }
  0x29   : > { %1436 = shalt.err (!%p1433_p4)
}
  0x2a   : > { %s1617_s10 = smov 64   ;;  %s1618_s13 = smov 4  }
  0x2b   : > { %1299 = dma.hbm_to_vmem [thread:$0]  (!%p1739_p11), %s2055_s1, 256, %s1732_s11, [#allocation7], %s1617_s10, %s1617_s10, %s1618_s13  }
  0x2c   : > { %s1437_s19 = scalar_lea.hbm %s2057_s3, 256 }
  0x2d   : > { %p1438_p1 = scmp.ne.s32.totalorder %s2057_s3, %s1437_s19  ;;  %p1444_p10 = scmp.lt.u32.totalorder %s1437_s19, %s2057_s3 }
  0x2f   : > { %p1440_p4 = pnand %p1438_p1, %p1411_p13 }
  0x31   : > { %p1441_p6 = pneg %p1440_p4 }
  0x33   : > { %p1446_p3 = pnand %p1444_p10, %p1441_p6 }
  0x35   : > { %1449 = shalt.err (!%p1446_p3)
}
  0x36   : > { %s1450_s11 = scalar_lea.vmem %s1743_s14, 256  ;;  %p1458_p12 = scmp.lt.s32.totalorder %s1743_s14, %s1743_s14 }
  0x37   : > { %p1451_p5 = scmp.ne.s32.totalorder %s1743_s14, %s1450_s11  ;;  %p1459_p0 = scmp.lt.s32.totalorder %s1450_s11, %s1450_s11 }
  0x39   : > { %p1453_p7 = pnand %p1451_p5, %p1411_p13  ;;  %p1460_p1 = por %p1459_p0, %p1458_p12 }
  0x3b   : > { %p1454_p9 = pneg %p1453_p7 }
  0x3d   : > { %p1461_p4 = pnand %p1460_p1, %p1454_p9 }
  0x3f   : > { %1464 = shalt.err (!%p1461_p4)
}
  0x40   : > { %1302 = dma.hbm_to_vmem [thread:$0]  (!%p1739_p11), %s2057_s3, 256, %s1743_s14, [#allocation7], %s1617_s10, %s1617_s10, %s1618_s13  }
  0x41   : > { %s39_s16 = sadd.s32 1, %s1609_s25  ;;  %s46_s17 = sadd.s32 1, %s1601_s23 }
  0x42   : > { %p41_p13 = scmp.ge.s32.totalorder %s39_s16, 2  ;;  %p53_p6 = scmp.ne.s32.totalorder %s1601_s23, %s1597_s22 }
  0x43   : > { %p54_p10 = scmp.eq.s32.totalorder %s1613_s26, 0  ;;  %p1316_p3 = scmp.lt.s32.totalorder %s1613_s26, 2 }
  0x44   : > { %s2087_s16 = smov (%p41_p13, %s39_s16), 0  ;;  %p1807_p7 = por %p1712_p2, %p53_p6 }
  0x45   : > { %p55_p5 = por %p54_p10, %p53_p6  ;;  %s43_s18 = ssub.s32 %s1609_s25, %s2087_s16 }
  0x46   : > { %s2073_s12 = scalar_select %p1807_p7, 1, 0 }
  0x47   : > { %s277_s19 = sand.u32 1, %s1601_s23   ;;  %p44_p9 = scmp.eq.s32.totalorder %s43_s18, 0 }
  0x48   : > { %s1161_s14 = sshll.u32 %s277_s19, 2  ;;  %s1162_s10 = sshll.u32 %s1609_s25, 6 }
  0x49   : > { %s1816_s13 = scalar_select %p44_p9, %s1601_s23, %s46_s17  }
  0x4a   : > { %s1821_s28 = scalar_lea.hbm %s2054_s0, %s1162_s10  ;;  %s281_s30 = scalar_lea.vmem [#allocation3], %s1161_s14 }
  0x4b   : > { %s288_s11 = sshll.u32 %s281_s30, 4  ;;  %p1825_p2 = pnand %p1316_p3, %p55_p5  ;;  %s1829_s11 = int_to_ptr.vmem [resolvable:$true] %s288_s11 }
  0x4c   : > { %s278_s15 = scalar_lea.sflag [#allocation4], %s277_s19  ;;  %s1465_s17 = scalar_lea.hbm %s1821_s28, 64 }
  0x4d   : > { %p1466_p11 = scmp.ne.s32.totalorder %s1821_s28, %s1465_s17  ;;  %p1467_p12 = pneg %p1825_p2 }
  0x4e   : > { %s1470_s10 = scalar_lea.hbm %s2054_s0, 128  ;;  %p1471_p4 = scmp.lt.u32.totalorder %s1821_s28, %s2054_s0 }
  0x4f   : > { %p1468_p0 = pnand %p1467_p12, %p1466_p11  ;;  %p1472_p13 = scmp.lt.u32.totalorder %s1470_s10, %s1465_s17 }
  0x50   : > { %p1474_p10 = scmp.lt.u32.totalorder %s1465_s17, %s1821_s28 }
  0x51   : > { %p1469_p1 = pneg %p1468_p0  ;;  %p1473_p6 = por %p1472_p13, %p1471_p4 }
  0x53   : > { %p1475_p3 = por %p1474_p10, %p1473_p6 }
  0x55   : > { %p1476_p5 = pnand %p1475_p3, %p1469_p1 }
  0x57   : > { %1479 = shalt.err (!%p1476_p5)
}
  0x58   : > { %s1480_s19 = scalar_lea.vmem %s1829_s11, 64  ;;  %s1619_s30 = smov [#allocation3]  }
  0x59   : > { %p1481_p9 = scmp.ne.s32.totalorder %s1829_s11, %s1480_s19  ;;  %s1485_s18 = sshll.u32 %s1619_s30, 4  ;;  %s1486_s18 = int_to_ptr.vmem [resolvable:$false] %s1485_s18 }
  0x5a   : > { %s1487_s14 = scalar_lea.vmem %s1486_s18, 128  ;;  %p1488_p7 = scmp.lt.s32.totalorder %s1829_s11, %s1486_s18 }
  0x5b   : > { %p1483_p11 = pnand %p1481_p9, %p1467_p12  ;;  %p1489_p4 = scmp.lt.s32.totalorder %s1487_s14, %s1480_s19 }
  0x5d   : > { %p1484_p0 = pneg %p1483_p11  ;;  %p1490_p13 = por %p1489_p4, %p1488_p7 }
  0x5f   : > { %p1491_p6 = pnand %p1490_p13, %p1484_p0 }
  0x61   : > { %1494 = shalt.err (!%p1491_p6)
}
  0x62   : > { %1306 = dma.hbm_to_vmem [thread:$0]  (!%p1825_p2), %s1821_s28, 64, %s1829_s11, %s278_s15  }
  0x63   : > { %297 = sbr.rel (%p1728_p8) target bundleno = 1617 (0x651), region = 40  ;;  %s1859_s17 = sand.u32 (!%p1728_p8), 1, %s1597_s22  }
  0x64   : > { %s1164_s10 = sshll.u32 (!%p1728_p8), %s1859_s17, 2  ;;  %s300_s20 = scalar_lea.sflag (!%p1728_p8), [#allocation4], %s1859_s17 }
  0x65   : > { %s303_s27 = scalar_lea.vmem (!%p1728_p8), [#allocation3], %s1164_s10  ;;  %p2075_p7 = scmp.ne.s32.totalorder (!%p1728_p8), %s2068_s7, 0 }
  0x6a   : > { %1576 = dma.done.wait (%p2075_p7), %s300_s20, 64  }
  0x6b   : > { %1578 = vsyncadd (%p2075_p7), %s300_s20, 4294967232  ;;  %p2076_p12 = scmp.ne.s32.totalorder %s2066_s29, 0 }
  0x6d   : > { %1580 = dma.done.wait (%p2076_p12), [#allocation7], 512  }
  0x6e   : > { %1582 = vsyncadd (%p2076_p12), [#allocation7], 4294966784  ;;  %vm357_vm0 = vcmask 261120   ;;  %v1620_v0 = vmov 0.0   ;;  %vm1621_vm1 = vmmov 0   ;;  %v1389_v1 = vld [vmem:[#allocation6] sm:$0xff]  }
  0x6f   : > { %1218 = vmatprep.subr.bf16.mxu0 %v1620_v0  ;;  %1222 = vmatprep.mubr.msk.bf16.mxu0 %vm1621_vm1, %v1620_v0  ;;  %358 = vst.msk [vmem:[#allocation2] sm:$0xff] %vm357_vm0, %v1620_v0  ;;  %v1390_v2 = vld [vmem:[#allocation6 + $0x8] sm:$0xff]   ;;  %v359_v3 = vld [vmem:[%s303_s27] sm:$0xf]  ;;  %v1169_v4 = vld [vmem:[%s2056_s2] ss:$0 sm:$0xff] }
  0x70   : > { %1226 = vmatprep.subr.bf16.mxu1 %v1620_v0  ;;  %1228 = vmatprep.mubr.msk.bf16.mxu1 %vm1621_vm1, %v1620_v0  ;;  %s1622_s9 = smov 120   ;;  %s1623_s28 = smov 96   ;;  %vm431_vm2 = vcmask 64512   ;;  %vm496_vm3 = vcmask 1043456   ;;  %vm889_vm4 = vcmask 130048   ;;  %vm891_vm5 = vcmask 195584  }
  0x71   : > { %1219 = vmatpush3.bf16.msra.mxu0 %v1389_v1  ;;  %s1624_s11 = smov 80   ;;  %s1625_s8 = smov 88  }
  0x72   : > { %1220 = vmatprep.subr.bf16.mxu0 %v1620_v0  ;;  %s1626_s15 = smov 72   ;;  %s1627_s19 = smov 112  }
  0x73   : > { %s1628_s30 = smov 104   ;;  %s1629_s18 = smov 56  }
  0x74   : > { %s1630_s14 = smov 64   ;;  %s1631_s10 = smov 40  }
  0x75   : > { %1221 = vmatpush3.bf16.msra.mxu0 %v1390_v2  ;;  %s1632_s20 = smov 48   ;;  %s1168_s27 = sshll.u32 %s1859_s17, 5 }
  0x76   : > { %1232 = vmatprep.subr.bf16.mxu0 %v1620_v0  ;;  %s1930_s29 = scalar_lea.vmem [#allocation10], %s1168_s27  ;;  %s1633_s7 = smov 8  }
  0x77   : > { %p2077_p2 = scmp.ne.s32.totalorder %s2073_s12, 0 }
  0x78   : > { %1223 = vmatmul.mubr.msk.bf16.vlgmr.msra.gmra.mrb[0].mxu0 %vm357_vm0, %v359_v3 }
  0x79   : > { %1234 = vmatprep.mubr.msk.bf16.mxu0 %vm1621_vm1, %v1620_v0 }
 0x14b   : > { %v421_v5 = vpop.f32.mrb[0].mxu0 }
 0x14c   : > { %v422_v6 = vadd.f32 %v1169_v4, %v421_v5  ;;  %v1224_v7 = vpop.f32.mrb[1].mxu0 }
 0x14d   : > { %v424_v8 = vpop.f32.mrb[2].mxu0 }
 0x14e   : > { %v1887_v9 = vpack.c.bf16 %v422_v6, %v422_v6  ;;  %v1225_v10 = vpop.f32.mrb[3].mxu0 }
 0x150   : > { %540 = vrot.lane.b32.xlu1 %v1887_v9, %s1622_s9  ;;  %429 = vrot.lane.b32.xlu0 %v1887_v9, %s1623_s28  ;;  %s1634_s9 = smov 16   ;;  %s1635_s28 = smov 24  }
 0x154   : > { %654 = vrot.lane.b32.xlu1 %v1887_v9, %s1624_s11  ;;  %542 = vrot.lane.b32.xlu0 %v1887_v9, %s1625_s8  ;;  %s1195_s11 = sshll.u32 %s1605_s24, 9  ;;  %s1003_s8 = sshll.u32 %s1930_s29, 4  ;;  %s1968_s8 = int_to_ptr.vmem [resolvable:$true] %s1003_s8 }
 0x158   : > { %766 = vrot.lane.b32.xlu1 %v1887_v9, %s1626_s15  ;;  %652 = vrot.lane.b32.xlu0 %v1887_v9, %s1627_s19 }
 0x15c   : > { %764 = vrot.lane.b32.xlu0 %v1887_v9, %s1628_s30  ;;  %s1966_s30 = scalar_lea.hbm %s2060_s6, %s1195_s11 }
 0x1c2   : > { %v430_v11 = vpop.permute.xlu0 %429  ;;  %v541_v14 = vpop.permute.xlu1 %540 }
 0x1c3   : > { %v436_v12 = vsel %vm431_vm2, %v430_v11, 0 }
 0x1c4   : > { %1227 = vmatpush3.bf16.xpose.msra.mxu1 %v436_v12 }
 0x1c5   : > { %1238 = vmatprep.subr.bf16.mxu1 %v1620_v0 }
 0x1c6   : > { %v543_v13 = vpop.permute.xlu0 %542  ;;  %v655_v16 = vpop.permute.xlu1 %654 }
 0x1c7   : > { %v548_v15 = vsel %vm431_vm2, %v543_v13, 0  ;;  %v660_v17 = vsel %vm431_vm2, %v655_v16, 0 }
 0x1ca   : > { %v767_v18 = vpop.permute.xlu1 %766  ;;  %v653_v19 = vpop.permute.xlu0 %652 }
 0x1cb   : > { %1229 = vmatmul.mubr.msk.bf16.vlgmr.msra.gmra.mrb[0].mxu1 %vm431_vm2, %v1887_v9  ;;  %v772_v20 = vsel %vm431_vm2, %v767_v18, 0 }
 0x1cc   : > { %1239 = vmatpush3.bf16.xpose.msra.mxu1 %v548_v15  ;;  %1240 = vmatprep.mubr.msk.bf16.mxu1 %vm1621_vm1, %v1620_v0 }
 0x1cd   : > { %1250 = vmatprep.subr.bf16.mxu1 %v1620_v0 }
 0x1ce   : > { %v765_v21 = vpop.permute.xlu0 %764 }
 0x1d3   : > { %1241 = vmatmul.mubr.msk.bf16.vlgmr.msra.gmra.mrb[4].mxu1 %vm431_vm2, %v541_v14 }
 0x1d4   : > { %1251 = vmatpush3.bf16.xpose.msra.mxu1 %v660_v17  ;;  %1252 = vmatprep.mubr.msk.bf16.mxu1 %vm1621_vm1, %v1620_v0 }
 0x1d5   : > { %1262 = vmatprep.subr.bf16.mxu1 %v1620_v0 }
 0x1db   : > { %1253 = vmatmul.mubr.msk.bf16.vlgmr.msra.gmra.mrb[8].mxu1 %vm431_vm2, %v653_v19 }
 0x1dc   : > { %1263 = vmatpush3.bf16.xpose.msra.mxu1 %v772_v20  ;;  %1264 = vmatprep.mubr.msk.bf16.mxu1 %vm1621_vm1, %v1620_v0 }
 0x1dd   : > { %1274 = vmatprep.subr.bf16.mxu1 %v1620_v0 }
 0x1e3   : > { %1265 = vmatmul.mubr.msk.bf16.vlgmr.msra.gmra.mrb[12].mxu1 %vm431_vm2, %v765_v21 }
 0x1e4   : > { %1278 = vmatprep.mubr.msk.bf16.mxu1 %vm1621_vm1, %v1620_v0 }
 0x29e   : > { %v472_v22 = vpop.f32.mrb[0].mxu1 }
 0x29f   : > { %v1230_v23 = vpop.f32.mrb[1].mxu1  ;;  %v478_v24 = vsel %vm431_vm2, %v472_v22, -inf }
 0x2a0   : > { %479 = vmax.xlane.f32.xlu1 %v478_v24  ;;  %v475_v25 = vpop.f32.mrb[2].mxu1 }
 0x2a1   : > { %v1231_v26 = vpop.f32.mrb[3].mxu1 }
 0x2a6   : > { %v584_v27 = vpop.f32.mrb[4].mxu1 }
 0x2a7   : > { %v1242_v28 = vpop.f32.mrb[5].mxu1  ;;  %v590_v29 = vsel %vm431_vm2, %v584_v27, -inf }
 0x2a8   : > { %591 = vmax.xlane.f32.xlu0 %v590_v29  ;;  %v587_v30 = vpop.f32.mrb[6].mxu1 }
 0x2a9   : > { %v1243_v31 = vpop.f32.mrb[7].mxu1 }
 0x2aa   : > { %v1391_v31 = vld [vmem:[#allocation8] sm:$0xff]  }
 0x2ab   : > { %1275 = vmatpush3.bf16.msra.mxu1 %v1391_v31 }
 0x2ac   : > { %1276 = vmatprep.subr.bf16.mxu1 %v1620_v0 }
 0x2ae   : > { %v696_v32 = vpop.f32.mrb[8].mxu1 }
 0x2af   : > { %v1254_v33 = vpop.f32.mrb[9].mxu1  ;;  %v702_v34 = vsel %vm431_vm2, %v696_v32, -inf }
 0x2b0   : > { %703 = vmax.xlane.f32.xlu0 %v702_v34  ;;  %v699_v35 = vpop.f32.mrb[10].mxu1 }
 0x2b1   : > { %v1255_v36 = vpop.f32.mrb[11].mxu1 }
 0x2b6   : > { %v808_v37 = vpop.f32.mrb[12].mxu1 }
 0x2b7   : > { %v1266_v38 = vpop.f32.mrb[13].mxu1  ;;  %v814_v39 = vsel %vm431_vm2, %v808_v37, -inf }
 0x2b8   : > { %815 = vmax.xlane.f32.xlu1 %v814_v39  ;;  %v811_v40 = vpop.f32.mrb[14].mxu1 }
 0x2b9   : > { %v1267_v41 = vpop.f32.mrb[15].mxu1 }
 0x32d   : > { %v480_v42 = vpop.xlane.xlu1 %479 }
 0x32e   : > { %v481_v43 = vsub.f32 %v472_v22, %v480_v42 }
 0x330   : > { %v482_v44 = vmul.f32 1.442695, %v481_v43 }
 0x332   : > { %1393 = vpow2.f32 %v482_v44 }
 0x335   : > { %v592_v45 = vpop.xlane.xlu0 %591 }
 0x336   : > { %v593_v46 = vsub.f32 %v584_v27, %v592_v45 }
 0x338   : > { %v594_v47 = vmul.f32 1.442695, %v593_v46 }
 0x33a   : > { %1395 = vpow2.f32 %v594_v47 }
 0x33c   : > { %v1394_v48 = vpop.eup %1393 }
 0x33d   : > { %v704_v49 = vpop.xlane.xlu0 %703  ;;  %v484_v50 = vsel %vm431_vm2, %v1394_v48, 0.0 }
 0x33e   : > { %v705_v51 = vsub.f32 %v696_v32, %v704_v49  ;;  %485 = vadd.xlane.f32.xlu0 %v484_v50  ;;  %v1392_v32 = vld [vmem:[#allocation8 + $0x8] sm:$0xff]  }
 0x33f   : > { %1277 = vmatpush3.bf16.msra.mxu1 %v1392_v32 }
 0x340   : > { %v706_v52 = vmul.f32 1.442695, %v705_v51 }
 0x342   : > { %1397 = vpow2.f32 %v706_v52 }
 0x344   : > { %v1396_v53 = vpop.eup %1395 }
 0x345   : > { %v596_v54 = vsel %vm431_vm2, %v1396_v53, 0.0  ;;  %v816_v57 = vpop.xlane.xlu1 %815 }
 0x346   : > { %597 = vadd.xlane.f32.xlu1 %v596_v54  ;;  %v817_v58 = vsub.f32 %v808_v37, %v816_v57 }
 0x348   : > { %v818_v59 = vmul.f32 1.442695, %v817_v58 }
 0x34a   : > { %1399 = vpow2.f32 %v818_v59 }
 0x34c   : > { %v1398_v55 = vpop.eup %1397 }
 0x34d   : > { %v708_v56 = vsel %vm431_vm2, %v1398_v55, 0.0 }
 0x34e   : > { %709 = vadd.xlane.f32.xlu0 %v708_v56 }
 0x354   : > { %v1400_v60 = vpop.eup %1399 }
 0x355   : > { %v820_v61 = vsel %vm431_vm2, %v1400_v60, 0.0 }
 0x357   : > { %604 = vrot.lane.b32.xlu1 %v1887_v9, %s1629_s18  ;;  %s975_s18 = scalar_lea.sflag [#allocation11], %s1859_s17 }
 0x364   : > { %491 = vrot.lane.b32.xlu0 %v1887_v9, %s1630_s14  ;;  %s1495_s14 = scalar_lea.vmem %s1968_s8, 512 }
 0x365   : > { %p1496_p8 = scmp.ne.s32.totalorder %s1968_s8, %s1495_s14 }
 0x367   : > { %p1497_p1 = pnand %p1496_p8, %p2077_p2 }
 0x368   : > { %828 = vrot.lane.b32.xlu0 %v1887_v9, %s1631_s10  ;;  %s1636_s10 = smov [#allocation10]  }
 0x369   : > { %p1498_p10 = pneg %p1497_p1 }
 0x37b   : > { %821 = vadd.xlane.f32.xlu1 %v820_v61 }
 0x38c   : > { %716 = vrot.lane.b32.xlu1 %v1887_v9, %s1632_s20  ;;  %s1499_s20 = sshll.u32 %s1636_s10, 4  ;;  %s1500_s20 = int_to_ptr.vmem [resolvable:$false] %s1499_s20 }
 0x38d   : > { %s1501_s27 = scalar_lea.vmem %s1500_s20, 1024  ;;  %p1502_p3 = scmp.lt.s32.totalorder %s1968_s8, %s1500_s20 }
 0x38e   : > { %p1503_p5 = scmp.lt.s32.totalorder %s1501_s27, %s1495_s14 }
 0x390   : > { %p1504_p9 = por %p1503_p5, %p1502_p3 }
 0x392   : > { %p1505_p11 = pnand %p1504_p9, %p1498_p10 }
 0x3cb   : > { %v486_v62 = vpop.xlane.xlu0 %485 }
 0x3cc   : > { %1401 = vrcp.f32 %v486_v62 }
 0x3d3   : > { %v598_v63 = vpop.xlane.xlu1 %597 }
 0x3d4   : > { %1403 = vrcp.f32 %v598_v63 }
 0x3d6   : > { %v1402_v1 = vpop.eup %1401 }
 0x3d7   : > { %v488_v2 = vmul.f32 %v1402_v1, %v1394_v48  ;;  %v605_v8 = vpop.permute.xlu1 %604 }
 0x3d8   : > { %v610_v10 = vsel %vm496_vm3, %v605_v8, 0 }
 0x3d9   : > { %489 = vst.msk [vmem:[%s1930_s29] sm:$0xff] %vm431_vm2, %v488_v2  ;;  %v490_v9 = vpack.c.bf16 %v488_v2, %v488_v2 }
 0x3db   : > { %v710_v3 = vpop.xlane.xlu0 %709 }
 0x3dc   : > { %1405 = vrcp.f32 %v710_v3 }
 0x3de   : > { %v1404_v4 = vpop.eup %1403 }
 0x3df   : > { %v600_v5 = vmul.f32 %v1404_v4, %v1396_v53  ;;  %v492_v6 = vpop.permute.xlu0 %491 }
 0x3e0   : > { %v498_v7 = vsel %vm496_vm3, %v492_v6, 0 }
 0x3e1   : > { %1176 = vst.msk [vmem:[%s1930_s29 + $0x8] sm:$0xff] %vm431_vm2, %v600_v5  ;;  %1233 = vmatpush3.bf16.msra.mxu0 %v498_v7  ;;  %v603_v13 = vpack.c.bf16 %v600_v5, %v600_v5 }
 0x3e2   : > { %1244 = vmatprep.subr.bf16.mxu0 %v1620_v0 }
 0x3e3   : > { %v829_v17 = vpop.permute.xlu0 %828 }
 0x3e4   : > { %1235 = vmatmul.mubr.msk.bf16.vlgmr.msra.gmra.mrb[4].mxu0 %vm431_vm2, %v490_v9  ;;  %v834_v19 = vsel %vm496_vm3, %v829_v17, 0 }
 0x3e5   : > { %1245 = vmatpush3.bf16.msra.mxu0 %v610_v10  ;;  %1246 = vmatprep.mubr.msk.bf16.mxu0 %vm1621_vm1, %v1620_v0 }
 0x3e6   : > { %v1406_v11 = vpop.eup %1405  ;;  %1256 = vmatprep.subr.bf16.mxu0 %v1620_v0 }
 0x3e7   : > { %v712_v12 = vmul.f32 %v1406_v11, %v1398_v55 }
 0x3e9   : > { %1179 = vst.msk [vmem:[%s1930_s29 + $0x10] sm:$0xff] %vm431_vm2, %v712_v12  ;;  %v715_v18 = vpack.c.bf16 %v712_v12, %v712_v12 }
 0x3ec   : > { %1247 = vmatmul.mubr.msk.bf16.vlgmr.msra.gmra.mrb[8].mxu0 %vm431_vm2, %v603_v13 }
 0x3ed   : > { %1258 = vmatprep.mubr.msk.bf16.mxu0 %vm1621_vm1, %v1620_v0 }
 0x408   : > { %v822_v14 = vpop.xlane.xlu1 %821 }
 0x409   : > { %1407 = vrcp.f32 %v822_v14 }
 0x40c   : > { %v717_v15 = vpop.permute.xlu1 %716 }
 0x40d   : > { %v722_v16 = vsel %vm496_vm3, %v717_v15, 0 }
 0x40e   : > { %1257 = vmatpush3.bf16.msra.mxu0 %v722_v16 }
 0x40f   : > { %1268 = vmatprep.subr.bf16.mxu0 %v1620_v0 }
 0x411   : > { %1259 = vmatmul.mubr.msk.bf16.vlgmr.msra.gmra.mrb[12].mxu0 %vm431_vm2, %v715_v18 }
 0x412   : > { %1269 = vmatpush3.bf16.msra.mxu0 %v834_v19  ;;  %1270 = vmatprep.mubr.msk.bf16.mxu0 %vm1621_vm1, %v1620_v0 }
 0x413   : > { %v1408_v20 = vpop.eup %1407 }
 0x414   : > { %v824_v21 = vmul.f32 %v1408_v20, %v1400_v60 }
 0x416   : > { %1182 = vst.msk [vmem:[%s1930_s29 + $0x18] sm:$0xff] %vm431_vm2, %v824_v21  ;;  %v827_v22 = vpack.c.bf16 %v824_v21, %v824_v21 }
 0x419   : > { %1271 = vmatmul.mubr.msk.bf16.vlgmr.msra.gmra.mrb[16].mxu0 %vm431_vm2, %v827_v22 }
 0x4b7   : > { %v534_v23 = vpop.f32.mrb[4].mxu0 }
 0x4b8   : > { %v1236_v24 = vpop.f32.mrb[5].mxu0 }
 0x4b9   : > { %v537_v25 = vpop.f32.mrb[6].mxu0 }
 0x4ba   : > { %v1237_v26 = vpop.f32.mrb[7].mxu0 }
 0x4bf   : > { %v646_v27 = vpop.f32.mrb[8].mxu0 }
 0x4c0   : > { %877 = vrot.lane.b32.xlu1 %v646_v27, %s1633_s7  ;;  %v1248_v28 = vpop.f32.mrb[9].mxu0 }
 0x4c1   : > { %v649_v29 = vpop.f32.mrb[10].mxu0 }
 0x4c2   : > { %v1249_v30 = vpop.f32.mrb[11].mxu0 }
 0x4e4   : > { %v758_v33 = vpop.f32.mrb[12].mxu0 }
 0x4e5   : > { %881 = vrot.lane.b32.xlu0 %v758_v33, %s1634_s9  ;;  %v1260_v34 = vpop.f32.mrb[13].mxu0 }
 0x4e6   : > { %v761_v35 = vpop.f32.mrb[14].mxu0 }
 0x4e7   : > { %v1261_v36 = vpop.f32.mrb[15].mxu0 }
 0x4ec   : > { %v870_v37 = vpop.f32.mrb[16].mxu0 }
 0x4ed   : > { %885 = vrot.lane.b32.xlu1 %v870_v37, %s1635_s28  ;;  %v1272_v38 = vpop.f32.mrb[17].mxu0 }
 0x4ee   : > { %v873_v39 = vpop.f32.mrb[18].mxu0 }
 0x4ef   : > { %v1273_v40 = vpop.f32.mrb[19].mxu0 }
 0x532   : > { %v878_v41 = vpop.permute.xlu1 %877 }
 0x533   : > { %v888_v42 = vsel %vm431_vm2, %v534_v23, %v878_v41 }
 0x557   : > { %v882_v0 = vpop.permute.xlu0 %881 }
 0x558   : > { %v890_v43 = vsel %vm889_vm4, %v888_v42, %v882_v0 }
 0x55f   : > { %v886_v44 = vpop.permute.xlu1 %885 }
 0x560   : > { %v892_v45 = vsel %vm891_vm5, %v890_v43, %v886_v44 }
 0x561   : > { %v893_v46 = vpack.c.bf16 %v892_v45, %v892_v45 }
 0x563   : > { %1279 = vmatmul.mubr.msk.bf16.vlgmr.msra.gmra.mrb[16].mxu1 %vm357_vm0, %v893_v46 }
 0x564   : > { %1508 = shalt.err (!%p1505_p11)
}
 0x565   : > { %s1509_s29 = scalar_lea.hbm %s1966_s30, 512  ;;  %s1513_s11 = scalar_lea.hbm %s2060_s6, 1024 }
 0x566   : > { %p1510_p0 = scmp.ne.s32.totalorder %s1966_s30, %s1509_s29  ;;  %p1514_p6 = scmp.lt.u32.totalorder %s1966_s30, %s2060_s6 }
 0x567   : > { %p1515_p7 = scmp.lt.u32.totalorder %s1513_s11, %s1509_s29  ;;  %p1517_p8 = scmp.lt.u32.totalorder %s1509_s29, %s1966_s30 }
 0x568   : > { %p1511_p4 = pnand %p1510_p0, %p2077_p2 }
 0x569   : > { %p1516_p12 = por %p1515_p7, %p1514_p6 }
 0x56a   : > { %p1512_p13 = pneg %p1511_p4 }
 0x56b   : > { %p1518_p1 = por %p1517_p8, %p1516_p12 }
 0x56d   : > { %p1519_p10 = pnand %p1518_p1, %p1512_p13 }
 0x56f   : > { %1522 = shalt.err (!%p1519_p10)
}
 0x570   : > { %s1637_s14 = smov 128   ;;  %v894_v47 = vld [vmem:[#allocation2] sm:$0xff]  ;;  %s1167_s10 = sshll.u32 %s1859_s17, 3 }
 0x571   : > { %1293 = dma.vmem_to_hbm [thread:$0]  (%p2077_p2), %s1968_s8, 512, %s1966_s30, %s975_s18, %s1637_s14, %s1637_s14, %s1633_s7  }
 0x572   : > { %v1187_v53 = vld [vmem:[%s2058_s4] ss:$0 sm:$0xff]  ;;  %s1190_s29 = sshll.u32 %s1605_s24, 7  ;;  %s340_s9 = scalar_lea.vmem [#allocation9], %s1167_s10 }
 0x573   : > { %s988_s28 = sshll.u32 %s340_s9, 4  ;;  %s2004_s30 = scalar_lea.hbm %s2059_s5, %s1190_s29  ;;  %s2006_s28 = int_to_ptr.vmem [resolvable:$true] %s988_s28 }
 0x574   : > { %s970_s18 = scalar_lea.sflag [#allocation5], %s1859_s17  ;;  %s1523_s11 = scalar_lea.vmem %s2006_s28, 128 }
 0x575   : > { %p1524_p3 = scmp.ne.s32.totalorder %s2006_s28, %s1523_s11  ;;  %s1638_s24 = smov [#allocation9]  }
 0x576   : > { %s1527_s15 = sshll.u32 %s1638_s24, 4  ;;  %s1528_s15 = int_to_ptr.vmem [resolvable:$false] %s1527_s15 }
 0x577   : > { %p1525_p5 = pnand %p1524_p3, %p2077_p2  ;;  %s1529_s19 = scalar_lea.vmem %s1528_s15, 256 }
 0x578   : > { %p1530_p11 = scmp.lt.s32.totalorder %s2006_s28, %s1528_s15  ;;  %p1531_p0 = scmp.lt.s32.totalorder %s1529_s19, %s1523_s11 }
 0x579   : > { %p1526_p9 = pneg %p1525_p5 }
 0x57a   : > { %p1532_p4 = por %p1531_p0, %p1530_p11 }
 0x57c   : > { %p1533_p13 = pnand %p1532_p4, %p1526_p9 }
 0x636   : > { %v948_v48 = vpop.f32.mrb[16].mxu1 }
 0x637   : > { %v954_v49 = vadd.f32 %v948_v48, %v894_v47  ;;  %v1280_v50 = vpop.f32.mrb[17].mxu1 }
 0x638   : > { %v951_v51 = vpop.f32.mrb[18].mxu1 }
 0x639   : > { %955 = vst.msk [vmem:[#allocation2] sm:$0xff] %vm357_vm0, %v954_v49  ;;  %v1281_v52 = vpop.f32.mrb[19].mxu1 }
 0x640   : > { %v959_v54 = vld [vmem:[#allocation2] sm:$0xff] }
 0x641   : > { %v967_v55 = vadd.f32 %v1187_v53, %v959_v54 }
 0x643   : > { %968 = vst.msk [vmem:[%s340_s9] sm:$0xff] %vm357_vm0, %v967_v55 }
 0x644   : > { %1536 = shalt.err (!%p1533_p13)
}
 0x645   : > { %s1537_s17 = scalar_lea.hbm %s2004_s30, 128  ;;  %s1541_s20 = scalar_lea.hbm %s2059_s5, 256 }
 0x646   : > { %p1538_p6 = scmp.ne.s32.totalorder %s2004_s30, %s1537_s17  ;;  %p1542_p8 = scmp.lt.u32.totalorder %s2004_s30, %s2059_s5 }
 0x647   : > { %p1543_p1 = scmp.lt.u32.totalorder %s1541_s20, %s1537_s17  ;;  %p1545_p3 = scmp.lt.u32.totalorder %s1537_s17, %s2004_s30 }
 0x648   : > { %p1539_p7 = pnand %p1538_p6, %p2077_p2 }
 0x649   : > { %p1544_p10 = por %p1543_p1, %p1542_p8 }
 0x64a   : > { %p1540_p12 = pneg %p1539_p7 }
 0x64b   : > { %p1546_p5 = por %p1545_p3, %p1544_p10 }
 0x64d   : > { %p1547_p9 = pnand %p1546_p5, %p1540_p12 }
 0x64f   : > { %1550 = shalt.err (!%p1547_p9)
}
 0x650   : > { %1292 = dma.vmem_to_hbm [thread:$0]  (%p2077_p2), %s2006_s28, 128, %s2004_s30, %s970_s18  }
 0x651 PF: > { %s2078_s9 = sld [smem:[#allocation16_spill]]  ;;  %s1018_s7 = sand.u32 1, %s1593_s21  }
 0x652   : > { %p2080_p0 = scmp.ge.s32.totalorder %s1613_s26, 2  ;;  %s1019_s8 = scalar_lea.sflag [#allocation5], %s1018_s7 }
 0x657   : > { %p2079_p11 = scmp.ne.s32.totalorder %s2078_s9, 0 }
 0x659   : > { %p1308_p4 = pnand %p2080_p0, %p2079_p11 }
 0x65b   : > { %1584 = dma.done.wait (!%p1308_p4), %s1019_s8, 128  }
 0x65c   : > { %1586 = vsyncadd (!%p1308_p4), %s1019_s8, 4294967168  ;;  %s1028_s11 = scalar_lea.sflag [#allocation11], %s1018_s7 }
 0x65d   : > { %1588 = dma.done.wait (!%p1308_p4), %s1028_s11, 512  }
 0x65e   : > { %1590 = vsyncadd (!%p1308_p4), %s1028_s11, 4294966784  ;;  %s27_s26 = sadd.s32 1, %s1613_s26   ;;  %s2081_s21 = smov %s1597_s22 }
 0x65f   : > { %p24_p13 = scmp.ge.s32.totalorder %s27_s26, 4   ;;  %s2082_s22 = smov %s1601_s23 }
 0x660   : > { %s2083_s23 = smov %s1816_s13  ;;  %s2084_s24 = smov %s1609_s25 }
 0x661   : > { %s2085_s25 = smov %s2087_s16  ;;  %26 = sbr.rel (!%p24_p13) target bundleno = 9 (0x9), region = 126 }
 0x668   :  { %1033 = vsyncpa [#allocation4], 1 }
 0x669   :  { %1035 = vsyncpa [#allocation4 + $0x1], 1 }
 0x66a   :  { %1036 = vsyncpa [#allocation7], 1 }
 0x66b   :  { %1037 = vsyncpa [#allocation5], 1 }
 0x66c   :  { %1039 = vsyncpa [#allocation5 + $0x1], 1 }
 0x66d   :  { %1040 = vsyncpa [#allocation11], 1 }
 0x66e   :  { %1042 = vsyncpa [#allocation11 + $0x1], 1 }

</bundles_post_ra>
